<compile_context>
chip_gen: v7x
topology: tpu7x:2x2x1
jax: 0.10.0
libtpu: 0.0.40
codegen_flags: <defaults>
</compile_context>

<pallas_src>
import functools

import jax
import jax.numpy as jnp
from jax.experimental import pallas as pl
from jax.experimental.pallas import tpu as pltpu


def _mlp_kernel(x_ref, w1_ref, b1_ref, w2_ref, b2_ref, w3_ref, b3_ref, o_ref):
    # Layer 1: (bb, 640) @ (640, 128), bf16 inputs / f32 accumulation.
    h1 = jnp.dot(x_ref[...], w1_ref[...], preferred_element_type=jnp.float32)
    h1 = jnp.maximum(h1 + b1_ref[...], 0.0)

    # Layer 2: (bb, 128) @ (128, 64).
    h2 = jnp.dot(h1.astype(w2_ref.dtype), w2_ref[...],
                 preferred_element_type=jnp.float32)
    h2 = jnp.maximum(h2 + b2_ref[...], 0.0)

    # Layer 3: contract w3 (1, 64) with h2 (bb, 64) over the feature axis so
    # the logits come out lane-major as (1, bb) -> unmasked lane-dense store.
    logits = jax.lax.dot_general(
        w3_ref[...], h2.astype(w3_ref.dtype),
        dimension_numbers=(((1,), (1,)), ((), ())),
        preferred_element_type=jnp.float32)
    logits = logits + b3_ref[0, 0]                 # scalar bias from SMEM
    o_ref[...] = jax.nn.sigmoid(logits).astype(o_ref.dtype)


def _round_up(x, m):
    return ((x + m - 1) // m) * m


def _pick_block_b(batch, block_b):
    """Batch tile: multiple of 128 (lane-dense output); >=2 grid steps when possible."""
    if batch < 128:
        return _round_up(max(batch, 1), 8)          # single (partial) block
    bb = max(128, (min(block_b, batch) // 128) * 128)
    # v7x has two TensorCores; keep at least 2 "parallel" grid steps.
    if batch >= 256 and pl.cdiv(batch, bb) < 2:
        bb = max(128, _round_up(pl.cdiv(batch, 2), 128))
    return bb


@functools.partial(jax.jit, static_argnames=("block_b",))
def mi_discriminator_forward(x, params, block_b=512):
    """Pallas forward pass of MIDiscriminator.

    x: (B, D_in) float32, D_in = emb_size + 2 * content_latent_size
    params: dict with w1 (D_in,128) b1 (1,128) w2 (128,64) b2 (1,64)
            w3 (64,1) b3 (1,1)   (weights stored (in, out), i.e. W.T of PyTorch)
    returns: (B, 1) float32
    """
    B, D_in = x.shape

    # bf16 activations/weights (f32 accumulation inside); biases stay f32.
    xb = x.astype(jnp.bfloat16)
    w1 = params["w1"].astype(jnp.bfloat16)
    b1 = params["b1"].astype(jnp.float32)
    w2 = params["w2"].astype(jnp.bfloat16)
    b2 = params["b2"].astype(jnp.float32)
    w3 = params["w3"].reshape(1, -1).astype(jnp.bfloat16)   # (1, 64) row
    b3 = params["b3"].reshape(1, 1).astype(jnp.float32)     # SMEM scalar
    H1 = w1.shape[1]
    H2 = w2.shape[1]

    bb = _pick_block_b(B, block_b)
    num_blocks = pl.cdiv(B, bb)

    # Well under VMEM limits on all gens (incl. v7x 64 MiB) for bb <= 2048:
    # x tile bf16 = bb*640*2 (double-buffered) + weights < 3 MiB at bb=512.
    out_row = pl.pallas_call(
        _mlp_kernel,
        out_shape=jax.ShapeDtypeStruct((1, num_blocks * bb), jnp.float32),
        grid_spec=pltpu.PrefetchScalarGridSpec(
            num_scalar_prefetch=0,
            grid=(num_blocks,),
            in_specs=[
                pl.BlockSpec((bb, D_in), lambda i: (i, 0)),          # x tile (streamed)
                pl.BlockSpec((D_in, H1), lambda i: (0, 0)),          # w1 (grid-invariant)
                pl.BlockSpec((1, H1), lambda i: (0, 0)),             # b1
                pl.BlockSpec((H1, H2), lambda i: (0, 0)),            # w2
                pl.BlockSpec((1, H2), lambda i: (0, 0)),             # b2
                pl.BlockSpec((1, H2), lambda i: (0, 0)),             # w3 row
                pl.BlockSpec(memory_space=pltpu.MemorySpace.SMEM),   # b3 scalar
            ],
            out_specs=pl.BlockSpec((1, bb), lambda i: (0, i)),       # lane-dense row
        ),
        compiler_params=pltpu.CompilerParams(
            dimension_semantics=("parallel",),
        ),
    )(xb, w1, b1, w2, b2, w3, b3)

    # Wrapper-side layout plumbing back to (B, 1); padded tail rows discarded.
    return out_row[0, :B].reshape(B, 1)


def init_params(key, content_latent_size=64, emb_size=512):
    """Deterministic init matching PyTorch nn.Linear default U[-1/sqrt(fan_in), 1/sqrt(fan_in)]."""
    d_in = emb_size + content_latent_size * 2
    dims = [(d_in, 128), (128, 64), (64, 1)]
    params = {}
    for idx, (fin, fout) in enumerate(dims, start=1):
        key, kw, kb = jax.random.split(key, 3)
        bound = 1.0 / jnp.sqrt(jnp.float32(fin))
        params[f"w{idx}"] = jax.random.uniform(
            kw, (fin, fout), jnp.float32, minval=-bound, maxval=bound)
        params[f"b{idx}"] = jax.random.uniform(
            kb, (1, fout), jnp.float32, minval=-bound, maxval=bound)
    return params


def _reference_forward(x, params):
    h1 = jnp.maximum(x @ params["w1"] + params["b1"], 0.0)
    h2 = jnp.maximum(h1 @ params["w2"] + params["b2"], 0.0)
    return jax.nn.sigmoid(h2 @ params["w3"] + params["b3"])


if __name__ == "__main__":
    content_latent_size = 64
    emb_size = 512
    batch = 256
    d_in = emb_size + 2 * content_latent_size   # 640

    key = jax.random.PRNGKey(0)
    key, kx = jax.random.split(key)
    x = jax.random.normal(kx, (batch, d_in), jnp.float32)
    params = init_params(key, content_latent_size, emb_size)

    # block_b=128 -> a grid of 2 "parallel" steps (keeps both v7x TCs busy).
    out = mi_discriminator_forward(x, params, block_b=128)
    out = jax.block_until_ready(out)

    ref = _reference_forward(x, params)
    assert out.shape == (batch, 1)
    # bf16 inputs/weights with f32 accumulation -> loosened tolerance vs f32 ref.
    err = float(jnp.max(jnp.abs(out - ref)))
    assert jnp.allclose(out, ref, atol=2e-2, rtol=0.0), err
    print("KERNEL_OK")
</pallas_src>

<mosaic_0001>
module attributes {stable_mosaic.version = 11 : i64} {
  func.func @_mlp_kernel(%arg0: i32, %arg1: memref<128x640xbf16, #tpu.memory_space<vmem>>, %arg2: memref<640x128xbf16, #tpu.memory_space<vmem>>, %arg3: memref<1x128xf32, #tpu.memory_space<vmem>>, %arg4: memref<128x64xbf16, #tpu.memory_space<vmem>>, %arg5: memref<1x64xf32, #tpu.memory_space<vmem>>, %arg6: memref<1x64xbf16, #tpu.memory_space<vmem>>, %arg7: memref<1x1xf32, #tpu.memory_space<smem>>, %arg8: memref<1x128xf32, #tpu.memory_space<vmem>>) attributes {dimension_semantics = [#tpu.dimension_semantics<parallel>], iteration_bounds = array<i64: 2>, scalar_prefetch = 0 : i64, scratch_operands = 0 : i64, tpu.core_type = #tpu.core_type<tc>, window_params = [{transform_indices = @transform_0, window_bounds = array<i64: 128, 640>}, {pipeline_mode = #tpu.pipeline_mode<synchronous>, transform_indices = @transform_1, window_bounds = array<i64: 640, 128>}, {pipeline_mode = #tpu.pipeline_mode<synchronous>, transform_indices = @transform_2, window_bounds = array<i64: 1, 128>}, {pipeline_mode = #tpu.pipeline_mode<synchronous>, transform_indices = @transform_3, window_bounds = array<i64: 128, 64>}, {pipeline_mode = #tpu.pipeline_mode<synchronous>, transform_indices = @transform_4, window_bounds = array<i64: 1, 64>}, {pipeline_mode = #tpu.pipeline_mode<synchronous>, transform_indices = @transform_5, window_bounds = array<i64: 1, 64>}, {transform_indices = @transform_6, window_bounds = array<i64: 1, 1>}, {transform_indices = @transform_7, window_bounds = array<i64: 1, 128>}]} {
    %c0 = arith.constant 0 : index
    %c0_0 = arith.constant 0 : index
    %0 = vector.load %arg1[%c0, %c0_0] : memref<128x640xbf16, #tpu.memory_space<vmem>>, vector<128x640xbf16>
    %c0_1 = arith.constant 0 : index
    %c0_2 = arith.constant 0 : index
    %1 = vector.load %arg2[%c0_1, %c0_2] : memref<640x128xbf16, #tpu.memory_space<vmem>>, vector<640x128xbf16>
    %cst = arith.constant dense<0.000000e+00> : vector<128x128xf32>
    %2 = tpu.matmul %0, %1, %cst {dimension_numbers = #tpu.dot_dimension_numbers<[1], [0], [0], [1], [0, 0, 1, 1], [], []>} : vector<128x640xbf16>, vector<640x128xbf16>, vector<128x128xf32> -> vector<128x128xf32>
    %c0_3 = arith.constant 0 : index
    %c0_4 = arith.constant 0 : index
    %3 = vector.load %arg3[%c0_3, %c0_4] : memref<1x128xf32, #tpu.memory_space<vmem>>, vector<1x128xf32>
    %4 = vector.broadcast %3 : vector<1x128xf32> to vector<128x128xf32>
    %5 = arith.addf %2, %4 : vector<128x128xf32>
    %cst_5 = arith.constant 0.000000e+00 : f32
    %6 = vector.broadcast %cst_5 : f32 to vector<128x128xf32>
    %7 = arith.maximumf %5, %6 : vector<128x128xf32>
    %8 = arith.truncf %7 : vector<128x128xf32> to vector<128x128xbf16>
    %c0_6 = arith.constant 0 : index
    %c0_7 = arith.constant 0 : index
    %9 = vector.load %arg4[%c0_6, %c0_7] : memref<128x64xbf16, #tpu.memory_space<vmem>>, vector<128x64xbf16>
    %cst_8 = arith.constant dense<0.000000e+00> : vector<128x64xf32>
    %10 = tpu.matmul %8, %9, %cst_8 {dimension_numbers = #tpu.dot_dimension_numbers<[1], [0], [0], [1], [0, 0, 1, 1], [], []>} : vector<128x128xbf16>, vector<128x64xbf16>, vector<128x64xf32> -> vector<128x64xf32>
    %c0_9 = arith.constant 0 : index
    %c0_10 = arith.constant 0 : index
    %11 = vector.load %arg5[%c0_9, %c0_10] : memref<1x64xf32, #tpu.memory_space<vmem>>, vector<1x64xf32>
    %12 = vector.broadcast %11 : vector<1x64xf32> to vector<128x64xf32>
    %13 = arith.addf %10, %12 : vector<128x64xf32>
    %cst_11 = arith.constant 0.000000e+00 : f32
    %14 = vector.broadcast %cst_11 : f32 to vector<128x64xf32>
    %15 = arith.maximumf %13, %14 : vector<128x64xf32>
    %c0_12 = arith.constant 0 : index
    %c0_13 = arith.constant 0 : index
    %16 = vector.load %arg6[%c0_12, %c0_13] : memref<1x64xbf16, #tpu.memory_space<vmem>>, vector<1x64xbf16>
    %17 = arith.truncf %15 : vector<128x64xf32> to vector<128x64xbf16>
    %cst_14 = arith.constant dense<0.000000e+00> : vector<1x128xf32>
    %18 = tpu.matmul %16, %17, %cst_14 {dimension_numbers = #tpu.dot_dimension_numbers<[1], [1], [0], [0], [0, 0, 1, 0], [], []>} : vector<1x64xbf16>, vector<128x64xbf16>, vector<1x128xf32> -> vector<1x128xf32>
    %c0_15 = arith.constant 0 : index
    %c0_16 = arith.constant 0 : index
    %19 = memref.load %arg7[%c0_15, %c0_16] : memref<1x1xf32, #tpu.memory_space<smem>>
    %20 = vector.broadcast %19 : f32 to vector<1x128xf32>
    %21 = arith.addf %18, %20 : vector<1x128xf32>
    %22 = arith.negf %21 : vector<1x128xf32>
    %23 = math.exp %22 : vector<1x128xf32>
    %cst_17 = arith.constant 1.000000e+00 : f32
    %24 = vector.broadcast %cst_17 : f32 to vector<1x128xf32>
    %25 = arith.addf %24, %23 : vector<1x128xf32>
    %26 = arith.divf %24, %25 : vector<1x128xf32>
    %c0_18 = arith.constant 0 : index
    %c0_19 = arith.constant 0 : index
    %27 = vector.load %arg8[%c0_18, %c0_19] : memref<1x128xf32, #tpu.memory_space<vmem>>, vector<1x128xf32>
    tpu.vector_store %arg8[%c0_18, %c0_19], %26 {strides = array<i32>} : memref<1x128xf32, #tpu.memory_space<vmem>>, vector<1x128xf32>,
    return
  }
  func.func @transform_0(%arg0: i32) -> (i32, i32) {
    %c0_i32 = arith.constant 0 : i32
    %c0_i32_0 = arith.constant 0 : i32
    return %arg0, %c0_i32 : i32, i32
  }
  func.func @transform_1(%arg0: i32) -> (i32, i32) {
    %c0_i32 = arith.constant 0 : i32
    %c0_i32_0 = arith.constant 0 : i32
    %c0_i32_1 = arith.constant 0 : i32
    return %c0_i32, %c0_i32_0 : i32, i32
  }
  func.func @transform_2(%arg0: i32) -> (i32, i32) {
    %c0_i32 = arith.constant 0 : i32
    %c0_i32_0 = arith.constant 0 : i32
    %c0_i32_1 = arith.constant 0 : i32
    return %c0_i32, %c0_i32_0 : i32, i32
  }
  func.func @transform_3(%arg0: i32) -> (i32, i32) {
    %c0_i32 = arith.constant 0 : i32
    %c0_i32_0 = arith.constant 0 : i32
    %c0_i32_1 = arith.constant 0 : i32
    return %c0_i32, %c0_i32_0 : i32, i32
  }
  func.func @transform_4(%arg0: i32) -> (i32, i32) {
    %c0_i32 = arith.constant 0 : i32
    %c0_i32_0 = arith.constant 0 : i32
    %c0_i32_1 = arith.constant 0 : i32
    return %c0_i32, %c0_i32_0 : i32, i32
  }
  func.func @transform_5(%arg0: i32) -> (i32, i32) {
    %c0_i32 = arith.constant 0 : i32
    %c0_i32_0 = arith.constant 0 : i32
    %c0_i32_1 = arith.constant 0 : i32
    return %c0_i32, %c0_i32_0 : i32, i32
  }
  func.func @transform_6(%arg0: i32) -> (i32, i32) {
    %c0_i32 = arith.constant 0 : i32
    %c0_i32_0 = arith.constant 0 : i32
    %c0_i32_1 = arith.constant 0 : i32
    return %c0_i32, %c0_i32_0 : i32, i32
  }
  func.func @transform_7(%arg0: i32) -> (i32, i32) {
    %c0_i32 = arith.constant 0 : i32
    %c0_i32_0 = arith.constant 0 : i32
    return %c0_i32, %arg0 : i32, i32
  }
}

</mosaic_0001>

<bundles_post_ra>
// kernel: mi_discriminator_forward.1
= control target key start
LH: loop header
LB: loop body
LE: loop exit
PB: predicated region body
PF: predicated region fallthrough
CT: control target
= control target key end

     0   :  { %s2536_s0 = inlined_call_operand.vmem [shape: bf16[256,640], index: 0, kind: input, shape index: {}]   ;;  %s2537_s1 = inlined_call_operand.vmem [shape: bf16[640,128], index: 1, kind: input, shape index: {}]   ;;  %s2538_s2 = inlined_call_operand.vmem [shape: f32[1,128], index: 2, kind: input, shape index: {}]   ;;  %s2539_s3 = inlined_call_operand.vmem [shape: bf16[128,64], index: 3, kind: input, shape index: {}]   ;;  %s2540_s4 = inlined_call_operand.vmem [shape: f32[1,64], index: 4, kind: input, shape index: {}]   ;;  %s2541_s5 = inlined_call_operand.vmem [shape: bf16[1,64], index: 5, kind: input, shape index: {}]   ;;  %s2542_s6 = inlined_call_operand.<no memory space> [shape: f32[1,1], index: 6, kind: input, shape index: {}]   ;;  %s2543_s7 = inlined_call_operand.hbm [shape: f32[1,256], index: 7, kind: output, shape index: {}]  }
   0x1   :  { %12 = sst [smem:[#allocation2]] %s2542_s6 }
   0x2   :  { %13 = vsyncpa [#allocation4], 0 }
   0x3   :  { %15 = vsyncpa [#allocation4 + $0x1], 0  ;;  %s2149_s26 = smov 0   ;;  %s2151_s27 = smov 0  }
   0x4   :  { %s2153_s28 = smov 0   ;;  %s2155_s29 = smov 0  }
   0x5 LB: > { %s1518_s6 = sadd.s32 4294967295, %s2101_s29   ;;  %s1519_s30 = sadd.s32 4294967294, %s2101_s29   ;;  %s2101_s29 = sphi %s2155_s29, %s2549_s29   ;;  %s2097_s28 = sphi %s2153_s28, %s2548_s28   ;;  %s2093_s27 = sphi %s2151_s27, %s2547_s27   ;;  %s2089_s26 = sphi %s2149_s26, %s2546_s26  }
   0x6   : > { %s2172_s8 = sadd.s32 1, %s2101_s29   ;;  %s180_s9 = sadd.s32 1, %s2097_s28 }
   0x7   : > { %s177_s10 = ssub.s32 %s2101_s29, %s2172_s8  ;;  %p190_p0 = scmp.ne.s32.totalorder %s2097_s28, %s2093_s27 }
   0x8   : > { %p178_p1 = scmp.eq.s32.totalorder %s177_s10, 0  ;;  %p191_p2 = scmp.eq.s32.totalorder %s1518_s6, 1 }
   0x9   : > { %p196_p3 = scmp.ne.s32.totalorder %s2093_s27, %s2089_s26  ;;  %p197_p4 = scmp.eq.s32.totalorder %s1519_s30, 1 }
   0xa   : > { %s2182_s11 = scalar_select %p178_p1, %s2097_s28, %s180_s9  }
   0xb   : > { %p2184_p5 = por %p191_p2, %p190_p0  ;;  %p2188_p6 = por %p197_p4, %p196_p3 }
   0xc   : > { %p1522_p7 = scmp.ge.s32.totalorder %s2101_s29, 1  ;;  %p243_p8 = scmp.lt.s32.totalorder %s2101_s29, 3 }
   0xe   : > { %p244_p9 = pnand %p1522_p7, %p243_p8 }
   0xf   : > { %v1931_v0 = vld [vmem:[%s2537_s1 + $0x40] sm:$0xff] (!%p244_p9)   ;;  %s2197_s16 = sshll.u32 (!%p244_p9), %s1518_s6, 4  ;;  %v1933_v2 = vld [vmem:[%s2537_s1 + $0x48] sm:$0xff] (!%p244_p9)   ;;  %v1935_v4 = vld [vmem:[%s2537_s1 + $0x50] sm:$0xff] (!%p244_p9)   ;;  %vm2104_vm0 = vmmov (!%p244_p9), 0   ;;  %vm1376_vm1 = vcmask (!%p244_p9), 523264  }
  0x10   : > { %247 = sbr.rel (%p244_p9) target bundleno = 852 (0x354), region = 48  ;;  %v1932_v1 = vld [vmem:[%s2537_s1] sm:$0xff] (!%p244_p9)   ;;  %1873 = vmatprep.subr.bf16.mxu1 (!%p244_p9), %v1931_v0  ;;  %1620 = vmatprep.subr.bf16.mxu0 (!%p244_p9), %v1931_v0  ;;  %p276_p10 = scmp.lt.s32.totalorder (!%p244_p9), %s2197_s16, 31  ;;  %v1934_v3 = vld [vmem:[%s2537_s1 + $0x8] sm:$0xff] (!%p244_p9)   ;;  %v1936_v5 = vld [vmem:[%s2537_s1 + $0x10] sm:$0xff] (!%p244_p9)  }
  0x11   : > { %1881 = vmatpush3.bf16.msra.mxu1 (!%p244_p9), %v1932_v1  ;;  %1621 = vmatpush3.bf16.msra.mxu0 (!%p244_p9), %v1932_v1  ;;  %v1937_v6 = vld [vmem:[%s2537_s1 + $0x58] sm:$0xff] (!%p244_p9)   ;;  %v1939_v8 = vld [vmem:[%s2537_s1 + $0x60] sm:$0xff] (!%p244_p9)   ;;  %v1941_v10 = vld [vmem:[%s2537_s1 + $0x68] sm:$0xff] (!%p244_p9)   ;;  %s1374_s21 = sld [smem:[#allocation2]] (!%p244_p9)  ;;  %s273_s23 = sand.u32 (!%p244_p9), 1, %s2093_s27  }
  0x12   : > { %1874 = vmatprep.subr.bf16.mxu1 (!%p244_p9), %v1933_v2  ;;  %1622 = vmatprep.subr.bf16.mxu0 (!%p244_p9), %v1933_v2  ;;  %v1938_v7 = vld [vmem:[%s2537_s1 + $0x18] sm:$0xff] (!%p244_p9)   ;;  %v1940_v9 = vld [vmem:[%s2537_s1 + $0x20] sm:$0xff] (!%p244_p9)   ;;  %v1942_v12 = vld [vmem:[%s2537_s1 + $0x28] sm:$0xff] (!%p244_p9)   ;;  %s274_s24 = scalar_lea.vmem (!%p244_p9), [#allocation3], %s273_s23  ;;  %s2494_s30 = scalar_lea.hbm (!%p244_p9), %s2543_s7, %s2197_s16 }
  0x13   : > { %v1943_v13 = vld [vmem:[%s2537_s1 + $0x70] sm:$0xff] (!%p244_p9)   ;;  %v1945_v16 = vld [vmem:[%s2537_s1 + $0x78] sm:$0xff] (!%p244_p9)   ;;  %v1950_v18 = vld [vmem:[%s2537_s1 + $0xc0] sm:$0xff] (!%p244_p9)   ;;  %s1452_s9 = scalar_lea.sflag (!%p244_p9), [#allocation4], %s273_s23 }
  0x14   : > { %v1944_v15 = vld [vmem:[%s2537_s1 + $0x30] sm:$0xff] (!%p244_p9)   ;;  %v1946_v17 = vld [vmem:[%s2537_s1 + $0x38] sm:$0xff] (!%p244_p9)   ;;  %v1956_v20 = vld [vmem:[%s2537_s1 + $0x100] sm:$0xff] (!%p244_p9)  }
  0x15   : > { %1882 = vmatpush3.bf16.msra.mxu1 (!%p244_p9), %v1934_v3  ;;  %1623 = vmatpush3.bf16.msra.mxu0 (!%p244_p9), %v1934_v3  ;;  %v1951_v21 = vld [vmem:[%s2537_s1 + $0x80] sm:$0xff] (!%p244_p9)   ;;  %v1955_v23 = vld [vmem:[%s2537_s1 + $0xc8] sm:$0xff] (!%p244_p9)   ;;  %v1961_v28 = vld [vmem:[%s2537_s1 + $0xd0] sm:$0xff] (!%p244_p9)  }
  0x16   : > { %1875 = vmatprep.subr.bf16.mxu1 (!%p244_p9), %v1935_v4  ;;  %1624 = vmatprep.subr.bf16.mxu0 (!%p244_p9), %v1935_v4  ;;  %v1962_v25 = vld [vmem:[%s2537_s1 + $0x108] sm:$0xff] (!%p244_p9)   ;;  %v1968_v30 = vld [vmem:[%s2537_s1 + $0x110] sm:$0xff] (!%p244_p9)   ;;  %v1967_v33 = vld [vmem:[%s2537_s1 + $0xd8] sm:$0xff] (!%p244_p9)  }
  0x17   : > { %s277_s25 = scalar_select %p276_p10, %s2197_s16, 31  ;;  %v1957_v27 = vld [vmem:[%s2537_s1 + $0x88] sm:$0xff]   ;;  %v1963_v31 = vld [vmem:[%s2537_s1 + $0x90] sm:$0xff]   ;;  %v1974_v35 = vld [vmem:[%s2537_s1 + $0x118] sm:$0xff]  }
  0x18   : > { %v1969_v37 = vld [vmem:[%s2537_s1 + $0x98] sm:$0xff]   ;;  %v1973_v38 = vld [vmem:[%s2537_s1 + $0xe0] sm:$0xff]   ;;  %v1979_v43 = vld [vmem:[%s2537_s1 + $0xe8] sm:$0xff]  }
  0x19   : > { %s1889_s14 = smul.u32 20, %s277_s25  ;;  %1883 = vmatpush3.bf16.msra.mxu1 %v1936_v5  ;;  %1625 = vmatpush3.bf16.msra.mxu0 %v1936_v5  ;;  %v1980_v40 = vld [vmem:[%s2537_s1 + $0x120] sm:$0xff]   ;;  %v1986_v45 = vld [vmem:[%s2537_s1 + $0x128] sm:$0xff]   ;;  %v1985_v48 = vld [vmem:[%s2537_s1 + $0xf0] sm:$0xff]  }
  0x1a   : > { %1876 = vmatprep.subr.bf16.mxu1 %v1937_v6  ;;  %1626 = vmatprep.subr.bf16.mxu0 %v1937_v6  ;;  %v1975_v41 = vld [vmem:[%s2537_s1 + $0xa0] sm:$0xff]   ;;  %v1981_v47 = vld [vmem:[%s2537_s1 + $0xa8] sm:$0xff]   ;;  %v1992_v50 = vld [vmem:[%s2537_s1 + $0x130] sm:$0xff]  }
  0x1b   : > { %s2228_s22 = scalar_lea.vmem %s2536_s0, %s1889_s14  ;;  %v1987_v51 = vld [vmem:[%s2537_s1 + $0xb0] sm:$0xff]   ;;  %v1991_v53 = vld [vmem:[%s2537_s1 + $0xf8] sm:$0xff]   ;;  %v2027_v2 = vld [vmem:[%s2539_s3] sm:$0xff]   ;;  %s2105_s14 = smov [#allocation3]  }
  0x1c   : > { %v1949_v11 = vld [vmem:[%s2228_s22 + $0xa4] ss:$20 sps:$4 sm:$0xff]   ;;  %v1947_v19 = vld [vmem:[%s2228_s22 + $0xa0] ss:$20 sps:$4 sm:$0xff]   ;;  %v1960_v29 = vld [vmem:[%s2228_s22 + $0xc8] ss:$20 sps:$4 sm:$0xff]  }
  0x1d   : > { %1884 = vmatpush3.bf16.msra.mxu1 %v1938_v7  ;;  %1627 = vmatpush3.bf16.msra.mxu0 %v1938_v7  ;;  %v1954_v14 = vld [vmem:[%s2228_s22 + $0x4] ss:$20 sps:$4 sm:$0xff]   ;;  %v1952_v22 = vld [vmem:[%s2228_s22] ss:$20 sps:$4 sm:$0xff]   ;;  %v1966_v32 = vld [vmem:[%s2228_s22 + $0x28] ss:$20 sps:$4 sm:$0xff]  }
  0x1e   : > { %1877 = vmatprep.subr.bf16.mxu1 %v1939_v8  ;;  %1628 = vmatprep.subr.bf16.mxu0 %v1939_v8  ;;  %v1958_v24 = vld [vmem:[%s2228_s22 + $0xcc] ss:$20 sps:$4 sm:$0xff]   ;;  %v1970_v34 = vld [vmem:[%s2228_s22 + $0xf4] ss:$20 sps:$4 sm:$0xff]   ;;  %v1972_v39 = vld [vmem:[%s2228_s22 + $0xf0] ss:$20 sps:$4 sm:$0xff]  }
  0x1f   : > { %930 = vmatprep.mubr.bf16.mxu1 %v1949_v11  ;;  %898 = vmatprep.mubr.bf16.mxu0 %v1954_v14  ;;  %v1964_v26 = vld [vmem:[%s2228_s22 + $0x2c] ss:$20 sps:$4 sm:$0xff]   ;;  %v1976_v36 = vld [vmem:[%s2228_s22 + $0x54] ss:$20 sps:$4 sm:$0xff]   ;;  %v1978_v42 = vld [vmem:[%s2228_s22 + $0x50] ss:$20 sps:$4 sm:$0xff]  }
  0x20   : > { %v1982_v44 = vld [vmem:[%s2228_s22 + $0x11c] ss:$20 sps:$4 sm:$0xff]   ;;  %v1984_v49 = vld [vmem:[%s2228_s22 + $0x118] ss:$20 sps:$4 sm:$0xff]   ;;  %v2000_v60 = vld [vmem:[%s2228_s22 + $0x34] ss:$20 sps:$4 sm:$0xff]  }
  0x21   : > { %1885 = vmatpush3.bf16.msra.mxu1 %v1940_v9  ;;  %1629 = vmatpush3.bf16.msra.mxu0 %v1940_v9  ;;  %v1988_v46 = vld [vmem:[%s2228_s22 + $0x7c] ss:$20 sps:$4 sm:$0xff]   ;;  %v1990_v52 = vld [vmem:[%s2228_s22 + $0x78] ss:$20 sps:$4 sm:$0xff]   ;;  %v2006_v61 = vld [vmem:[%s2228_s22 + $0x60] ss:$20 sps:$4 sm:$0xff]  }
  0x22   : > { %1878 = vmatprep.subr.bf16.mxu1 %v1941_v10  ;;  %1630 = vmatprep.subr.bf16.mxu0 %v1941_v10  ;;  %v1996_v54 = vld [vmem:[%s2228_s22 + $0xc] ss:$20 sps:$4 sm:$0xff]   ;;  %v1997_v55 = vld [vmem:[%s2537_s1 + $0x138] sm:$0xff]   ;;  %v1998_v56 = vld [vmem:[%s2228_s22 + $0x10] ss:$20 sps:$4 sm:$0xff]   ;;  %s2043_s15 = sshll.u32 %s2105_s14, 4  ;;  %s2044_s15 = int_to_ptr.vmem [resolvable:$false] %s2043_s15 }
  0x23   : > { %v1993_v57 = vld [vmem:[%s2537_s1 + $0xb8] sm:$0xff]   ;;  %v2002_v62 = vld [vmem:[%s2228_s22 + $0x30] ss:$20 sps:$4 sm:$0xff]   ;;  %v2028_v3 = vld [vmem:[%s2539_s3 + $0x8] sm:$0xff]   ;;  %s2045_s17 = scalar_lea.vmem %s2044_s15, 32 }
  0x24   : > { %v1994_v58 = vld [vmem:[%s2228_s22 + $0x8] ss:$20 sps:$4 sm:$0xff]   ;;  %v1999_v59 = vld [vmem:[%s2228_s22 + $0x38] ss:$20 sps:$4 sm:$0xff]   ;;  %v2014_v1 = vld [vmem:[%s2228_s22 + $0xb0] ss:$20 sps:$4 sm:$0xff]  }
  0x25   : > { %1886 = vmatpush3.bf16.msra.mxu1 %v1942_v12  ;;  %1631 = vmatpush3.bf16.msra.mxu0 %v1942_v12  ;;  %v2007_v63 = vld [vmem:[%s2228_s22 + $0x88] ss:$20 sps:$4 sm:$0xff]   ;;  %v2005_v4 = vld [vmem:[%s2228_s22 + $0x58] ss:$20 sps:$4 sm:$0xff]   ;;  %v2022_v7 = vld [vmem:[%s2228_s22 + $0x100] ss:$20 sps:$4 sm:$0xff]  }
  0x26   : > { %1879 = vmatprep.subr.bf16.mxu1 %v1943_v13  ;;  %1632 = vmatprep.subr.bf16.mxu0 %v1943_v13  ;;  %v2003_v0 = vld [vmem:[%s2228_s22 + $0x5c] ss:$20 sps:$4 sm:$0xff]   ;;  %v2015_v5 = vld [vmem:[%s2228_s22 + $0xd8] ss:$20 sps:$4 sm:$0xff]   ;;  %v2010_v8 = vld [vmem:[%s2228_s22 + $0x80] ss:$20 sps:$4 sm:$0xff]  }
  0x27   : > { %v2008_v6 = vld [vmem:[%s2228_s22 + $0x84] ss:$20 sps:$4 sm:$0xff]   ;;  %v2023_v9 = vld [vmem:[%s2228_s22 + $0x128] ss:$20 sps:$4 sm:$0xff]   ;;  %v2011_v10 = vld [vmem:[%s2228_s22 + $0xac] ss:$20 sps:$4 sm:$0xff]  }
  0x28   : > { %v2013_v11 = vld [vmem:[%s2228_s22 + $0xa8] ss:$20 sps:$4 sm:$0xff]   ;;  %v2018_v13 = vld [vmem:[%s2228_s22 + $0xd0] ss:$20 sps:$4 sm:$0xff]  }
  0x29   : > { %1887 = vmatpush3.bf16.msra.mxu1 %v1944_v15  ;;  %1633 = vmatpush3.bf16.msra.mxu0 %v1944_v15  ;;  %v2016_v12 = vld [vmem:[%s2228_s22 + $0xd4] ss:$20 sps:$4 sm:$0xff]   ;;  %v2019_v14 = vld [vmem:[%s2228_s22 + $0xfc] ss:$20 sps:$4 sm:$0xff]   ;;  %v2021_v15 = vld [vmem:[%s2228_s22 + $0xf8] ss:$20 sps:$4 sm:$0xff]  }
  0x2a   : > { %1880 = vmatprep.subr.bf16.mxu1 %v1945_v16  ;;  %1634 = vmatprep.subr.bf16.mxu0 %v1945_v16  ;;  %v2024_v16 = vld [vmem:[%s2228_s22 + $0x124] ss:$20 sps:$4 sm:$0xff]  }
  0x2d   : > { %1888 = vmatpush3.bf16.msra.mxu1 %v1946_v17  ;;  %1635 = vmatpush3.bf16.msra.mxu0 %v1946_v17  ;;  %v2026_v17 = vld [vmem:[%s2228_s22 + $0x120] ss:$20 sps:$4 sm:$0xff]   ;;  %s1464_s22 = sshll.u32 %s274_s24, 4  ;;  %s2496_s22 = int_to_ptr.vmem [resolvable:$true] %s1464_s22 }
  0x2e   : > { %1684 = vmatprep.subr.bf16.mxu1 %v1950_v18  ;;  %1789 = vmatprep.subr.bf16.mxu0 %v1956_v20  ;;  %v2029_v18 = vld [vmem:[%s2539_s3 + $0x10] sm:$0xff]   ;;  %s2039_s10 = scalar_lea.vmem %s2496_s22, 16  ;;  %p2046_p0 = scmp.lt.s32.totalorder %s2496_s22, %s2044_s15 }
  0x2f   : > { %p2040_p11 = scmp.ne.s32.totalorder %s2496_s22, %s2039_s10  ;;  %p2047_p1 = scmp.lt.s32.totalorder %s2045_s17, %s2039_s10 }
  0x30   : > { %931 = vmatmul.mubr.bf16.vlgmr.msra.gmra.mrb[0].mxu1 %v1947_v19  ;;  %899 = vmatmul.mubr.bf16.vlgmr.msra.gmra.mrb[0].mxu0 %v1952_v22  ;;  %v2030_v19 = vld [vmem:[%s2539_s3 + $0x18] sm:$0xff]   ;;  %v2033_v22 = vld [vmem:[%s2539_s3 + $0x30] sm:$0xff]  }
  0x31   : > { %1685 = vmatpush3.bf16.msra.mxu1 %v1951_v21  ;;  %1790 = vmatpush3.bf16.msra.mxu0 %v1956_v20  ;;  %v2031_v20 = vld [vmem:[%s2539_s3 + $0x20] sm:$0xff]   ;;  %v2032_v21 = vld [vmem:[%s2539_s3 + $0x28] sm:$0xff]   ;;  %p2041_p12 = pnand %p2040_p11, %p2184_p5  ;;  %p2048_p2 = por %p2047_p1, %p2046_p0 }
  0x32   : > { %1686 = vmatprep.subr.bf16.mxu1 %v1955_v23  ;;  %938 = vmatprep.mubr.bf16.mxu1 %v1958_v24  ;;  %v2034_v23 = vld [vmem:[%s2539_s3 + $0x38] sm:$0xff]  }
  0x33   : > { %1791 = vmatprep.subr.bf16.mxu0 %v1962_v25  ;;  %906 = vmatprep.mubr.bf16.mxu0 %v1964_v26  ;;  %p2042_p13 = pneg %p2041_p12 }
  0x35   : > { %1687 = vmatpush3.bf16.msra.mxu1 %v1957_v27  ;;  %1792 = vmatpush3.bf16.msra.mxu0 %v1962_v25  ;;  %p2049_p3 = pnand %p2048_p2, %p2042_p13 }
  0x36   : > { %1688 = vmatprep.subr.bf16.mxu1 %v1961_v28  ;;  %1793 = vmatprep.subr.bf16.mxu0 %v1968_v30 }
  0x38   : > { %939 = vmatmul.mubr.bf16.gmra.mrb[4].mxu1 %v1960_v29  ;;  %907 = vmatmul.mubr.bf16.gmra.mrb[4].mxu0 %v1966_v32 }
  0x39   : > { %1689 = vmatpush3.bf16.msra.mxu1 %v1963_v31  ;;  %1794 = vmatpush3.bf16.msra.mxu0 %v1968_v30 }
  0x3a   : > { %1690 = vmatprep.subr.bf16.mxu1 %v1967_v33  ;;  %946 = vmatprep.mubr.bf16.mxu1 %v1970_v34 }
  0x3b   : > { %1795 = vmatprep.subr.bf16.mxu0 %v1974_v35  ;;  %914 = vmatprep.mubr.bf16.mxu0 %v1976_v36 }
  0x3d   : > { %1691 = vmatpush3.bf16.msra.mxu1 %v1969_v37  ;;  %1796 = vmatpush3.bf16.msra.mxu0 %v1974_v35 }
  0x3e   : > { %1692 = vmatprep.subr.bf16.mxu1 %v1973_v38  ;;  %1797 = vmatprep.subr.bf16.mxu0 %v1980_v40 }
  0x40   : > { %947 = vmatmul.mubr.bf16.gmra.mrb[8].mxu1 %v1972_v39  ;;  %915 = vmatmul.mubr.bf16.gmra.mrb[8].mxu0 %v1978_v42 }
  0x41   : > { %1693 = vmatpush3.bf16.msra.mxu1 %v1975_v41  ;;  %1798 = vmatpush3.bf16.msra.mxu0 %v1980_v40 }
  0x42   : > { %1694 = vmatprep.subr.bf16.mxu1 %v1979_v43  ;;  %954 = vmatprep.mubr.bf16.mxu1 %v1982_v44 }
  0x43   : > { %1799 = vmatprep.subr.bf16.mxu0 %v1986_v45  ;;  %922 = vmatprep.mubr.bf16.mxu0 %v1988_v46 }
  0x45   : > { %1695 = vmatpush3.bf16.msra.mxu1 %v1981_v47  ;;  %1800 = vmatpush3.bf16.msra.mxu0 %v1986_v45 }
  0x46   : > { %1696 = vmatprep.subr.bf16.mxu1 %v1985_v48  ;;  %1801 = vmatprep.subr.bf16.mxu0 %v1992_v50 }
  0x48   : > { %955 = vmatmul.mubr.bf16.gmra.mrb[12].mxu1 %v1984_v49  ;;  %923 = vmatmul.mubr.bf16.gmra.mrb[12].mxu0 %v1990_v52 }
  0x49   : > { %1697 = vmatpush3.bf16.msra.mxu1 %v1987_v51  ;;  %1802 = vmatpush3.bf16.msra.mxu0 %v1992_v50 }
  0x4a   : > { %1698 = vmatprep.subr.bf16.mxu1 %v1991_v53  ;;  %995 = vmatprep.mubr.bf16.mxu1 %v1996_v54 }
  0x4b   : > { %1803 = vmatprep.subr.bf16.mxu0 %v1997_v55  ;;  %1805 = vmatprep.mubr.bf16.mxu0 %v1998_v56 }
  0x4d   : > { %1699 = vmatpush3.bf16.msra.mxu1 %v1993_v57  ;;  %1804 = vmatpush3.bf16.msra.mxu0 %v1997_v55 }
  0x4e   : > { %1821 = vmatprep.subr.bf16.mxu1 %v2027_v2 }
  0x50   : > { %996 = vmatmul.mubr.bf16.vlgmr.msra.gmra.mrb[16].mxu1 %v1994_v58  ;;  %1806 = vmatmul.mubr.bf16.vlgmr.msra.gmra.mrb[16].mxu0 %v1999_v59 }
  0x51   : > { %1003 = vmatprep.mubr.bf16.mxu1 %v2000_v60  ;;  %1809 = vmatprep.mubr.bf16.mxu0 %v2006_v61 }
  0x52   : > { %1822 = vmatpush3.bf16.msra.mxu1 %v2027_v2 }
  0x53   : > { %1823 = vmatprep.subr.bf16.mxu1 %v2028_v3 }
  0x56   : > { %1824 = vmatpush3.bf16.msra.mxu1 %v2028_v3 }
  0x57   : > { %1825 = vmatprep.subr.bf16.mxu1 %v2029_v18 }
  0x58   : > { %1004 = vmatmul.mubr.bf16.gmra.mrb[20].mxu1 %v2002_v62  ;;  %1810 = vmatmul.mubr.bf16.gmra.mrb[20].mxu0 %v2007_v63 }
  0x59   : > { %1011 = vmatprep.mubr.bf16.mxu1 %v2003_v0  ;;  %1813 = vmatprep.mubr.bf16.mxu0 %v2014_v1 }
  0x5a   : > { %1826 = vmatpush3.bf16.msra.mxu1 %v2029_v18 }
  0x5b   : > { %1827 = vmatprep.subr.bf16.mxu1 %v2030_v19 }
  0x5e   : > { %1828 = vmatpush3.bf16.msra.mxu1 %v2030_v19 }
  0x5f   : > { %1829 = vmatprep.subr.bf16.mxu1 %v2031_v20 }
  0x60   : > { %1012 = vmatmul.mubr.bf16.gmra.mrb[24].mxu1 %v2005_v4  ;;  %1814 = vmatmul.mubr.bf16.gmra.mrb[24].mxu0 %v2015_v5 }
  0x61   : > { %1019 = vmatprep.mubr.bf16.mxu1 %v2008_v6  ;;  %1817 = vmatprep.mubr.bf16.mxu0 %v2022_v7 }
  0x62   : > { %1830 = vmatpush3.bf16.msra.mxu1 %v2031_v20 }
  0x63   : > { %1831 = vmatprep.subr.bf16.mxu1 %v2032_v21 }
  0x66   : > { %1832 = vmatpush3.bf16.msra.mxu1 %v2032_v21 }
  0x67   : > { %1833 = vmatprep.subr.bf16.mxu1 %v2033_v22 }
  0x68   : > { %1020 = vmatmul.mubr.bf16.gmra.mrb[28].mxu1 %v2010_v8  ;;  %1818 = vmatmul.mubr.bf16.gmra.mrb[28].mxu0 %v2023_v9 }
  0x69   : > { %1027 = vmatprep.mubr.bf16.mxu1 %v2011_v10  ;;  %v2410_v10 = vld [vmem:[%s2538_s2] ss:$0 sm:$0xff] }
  0x6a   : > { %1834 = vmatpush3.bf16.msra.mxu1 %v2033_v22 }
  0x6b   : > { %1835 = vmatprep.subr.bf16.mxu1 %v2034_v23 }
  0x6e   : > { %1836 = vmatpush3.bf16.msra.mxu1 %v2034_v23 }
  0x70   : > { %1028 = vmatmul.mubr.bf16.gmra.mrb[32].mxu1 %v2013_v11 }
  0x71   : > { %1035 = vmatprep.mubr.bf16.mxu1 %v2016_v12 }
  0x78   : > { %1036 = vmatmul.mubr.bf16.gmra.mrb[36].mxu1 %v2018_v13 }
  0x79   : > { %1043 = vmatprep.mubr.bf16.mxu1 %v2019_v14 }
  0x80   : > { %1044 = vmatmul.mubr.bf16.gmra.mrb[40].mxu1 %v2021_v15 }
  0x81   : > { %1051 = vmatprep.mubr.bf16.mxu1 %v2024_v16 }
  0x88   : > { %1052 = vmatmul.mubr.bf16.gmra.mrb[44].mxu1 %v2026_v17 }
 0x103   : > { %v1660_v24 = vpop.f32.mrb[0].mxu1  ;;  %v1636_v25 = vpop.f32.mrb[0].mxu0 }
 0x104   : > { %v1661_v26 = vpop.f32.mrb[1].mxu1  ;;  %v1637_v27 = vpop.f32.mrb[1].mxu0 }
 0x105   : > { %v2387_v28 = vadd.f32 %v1661_v26, %v1660_v24  ;;  %v1663_v29 = vpop.f32.mrb[2].mxu1  ;;  %v1638_v30 = vadd.f32 %v1637_v27, %v1636_v25  ;;  %v1639_v31 = vpop.f32.mrb[2].mxu0 }
 0x106   : > { %v1664_v32 = vpop.f32.mrb[3].mxu1  ;;  %v1640_v33 = vpop.f32.mrb[3].mxu0 }
 0x107   : > { %v2389_v34 = vadd.f32 %v1664_v32, %v1663_v29  ;;  %v1641_v35 = vadd.f32 %v1640_v33, %v1639_v31  ;;  %v901_v13 = vadd.f32 %v1638_v30, %v2410_v10 }
 0x109   : > { %v904_v19 = vadd.f32 %v1641_v35, %v2410_v10 }
 0x10b   : > { %v1666_v36 = vpop.f32.mrb[4].mxu1  ;;  %v1642_v37 = vpop.f32.mrb[4].mxu0 }
 0x10c   : > { %v1667_v38 = vpop.f32.mrb[5].mxu1  ;;  %v1643_v39 = vpop.f32.mrb[5].mxu0 }
 0x10d   : > { %v2391_v40 = vadd.f32 %v1667_v38, %v1666_v36  ;;  %v1669_v41 = vpop.f32.mrb[6].mxu1  ;;  %v1644_v42 = vadd.f32 %v1643_v39, %v1642_v37  ;;  %v1645_v43 = vpop.f32.mrb[6].mxu0 }
 0x10e   : > { %v1670_v44 = vpop.f32.mrb[7].mxu1  ;;  %v1646_v45 = vpop.f32.mrb[7].mxu0 }
 0x10f   : > { %v2393_v46 = vadd.f32 %v1670_v44, %v1669_v41  ;;  %v1647_v47 = vadd.f32 %v1646_v45, %v1645_v43  ;;  %v909_v31 = vadd.f32 %v1644_v42, %v2410_v10 }
 0x111   : > { %v912_v35 = vadd.f32 %v1647_v47, %v2410_v10 }
 0x113   : > { %v1672_v48 = vpop.f32.mrb[8].mxu1  ;;  %v1648_v49 = vpop.f32.mrb[8].mxu0 }
 0x114   : > { %v1673_v50 = vpop.f32.mrb[9].mxu1  ;;  %v1649_v51 = vpop.f32.mrb[9].mxu0 }
 0x115   : > { %v2395_v52 = vadd.f32 %v1673_v50, %v1672_v48  ;;  %v1675_v53 = vpop.f32.mrb[10].mxu1  ;;  %v1650_v54 = vadd.f32 %v1649_v51, %v1648_v49  ;;  %v1651_v55 = vpop.f32.mrb[10].mxu0 }
 0x116   : > { %v1676_v56 = vpop.f32.mrb[11].mxu1  ;;  %v1652_v57 = vpop.f32.mrb[11].mxu0 }
 0x117   : > { %v2397_v58 = vadd.f32 %v1676_v56, %v1675_v53  ;;  %v1653_v59 = vadd.f32 %v1652_v57, %v1651_v55  ;;  %v917_v55 = vadd.f32 %v1650_v54, %v2410_v10 }
 0x11b   : > { %v1678_v60 = vpop.f32.mrb[12].mxu1  ;;  %v1654_v61 = vpop.f32.mrb[12].mxu0 }
 0x11c   : > { %v1679_v62 = vpop.f32.mrb[13].mxu1  ;;  %v1655_v63 = vpop.f32.mrb[13].mxu0 }
 0x11d   : > { %v2399_v0 = vadd.f32 %v1679_v62, %v1678_v60  ;;  %v1681_v1 = vpop.f32.mrb[14].mxu1  ;;  %v2401_v2 = vadd.f32 %v1655_v63, %v1654_v61  ;;  %v1657_v3 = vpop.f32.mrb[14].mxu0 }
 0x11e   : > { %v1682_v4 = vpop.f32.mrb[15].mxu1  ;;  %v1658_v5 = vpop.f32.mrb[15].mxu0 }
 0x11f   : > { %v2403_v6 = vadd.f32 %v1682_v4, %v1681_v1  ;;  %v2405_v7 = vadd.f32 %v1658_v5, %v1657_v3  ;;  %v920_v1 = vadd.f32 %v1653_v59, %v2410_v10 }
 0x123   : > { %v1700_v8 = vpop.f32.mrb[16].mxu1  ;;  %v1807_v9 = vpop.f32.mrb[16].mxu0 }
 0x124   : > { %v1701_v11 = vpop.f32.mrb[17].mxu1  ;;  %v1094_v12 = vpop.f32.mrb[17].mxu0 }
 0x125   : > { %v1702_v14 = vadd.f32 %v1701_v11, %v1700_v8  ;;  %v1703_v15 = vpop.f32.mrb[18].mxu1  ;;  %v1808_v16 = vpop.f32.mrb[18].mxu0 }
 0x126   : > { %v1704_v17 = vpop.f32.mrb[19].mxu1  ;;  %v1097_v18 = vpop.f32.mrb[19].mxu0 }
 0x127   : > { %v1705_v20 = vadd.f32 %v1704_v17, %v1703_v15  ;;  %v998_v21 = vadd.f32 %v1702_v14, %v901_v13  ;;  %v925_v15 = vadd.f32 %v2401_v2, %v2410_v10 }
 0x129   : > { %v1095_v22 = vadd.f32 %v1094_v12, %v998_v21  ;;  %v1001_v23 = vadd.f32 %v1705_v20, %v904_v19 }
 0x12b   : > { %v1098_v24 = vadd.f32 %v1097_v18, %v1001_v23  ;;  %v1706_v25 = vpop.f32.mrb[20].mxu1  ;;  %v1811_v26 = vpop.f32.mrb[20].mxu0  ;;  %v1157_v32 = vmax.f32 %v1095_v22, 0.0  ;;  %v928_v22 = vadd.f32 %v2405_v7, %v2410_v10  ;;  %v936_v7 = vadd.f32 %v2389_v34, %v2410_v10 }
 0x12c   : > { %v1707_v27 = vpop.f32.mrb[21].mxu1  ;;  %v1110_v29 = vpop.f32.mrb[21].mxu0  ;;  %v944_v34 = vadd.f32 %v2393_v46, %v2410_v10  ;;  %v952_v46 = vadd.f32 %v2397_v58, %v2410_v10  ;;  %v960_v58 = vadd.f32 %v2403_v6, %v2410_v10  ;;  %v2452_v6 = vld [vmem:[%s2540_s4] ss:$0 sm:$0xff] }
 0x12d   : > { %v1158_v30 = vmax.f32 %v1098_v24, 0.0  ;;  %v1708_v33 = vadd.f32 %v1707_v27, %v1706_v25  ;;  %v1709_v36 = vpop.f32.mrb[22].mxu1  ;;  %v1812_v37 = vpop.f32.mrb[22].mxu0 }
 0x12e   : > { %v1710_v38 = vpop.f32.mrb[23].mxu1  ;;  %v1113_v39 = vpop.f32.mrb[23].mxu0 }
 0x12f   : > { %v1173_v41 = vpack.c.bf16 %v1158_v30, %v1157_v32  ;;  %v1006_v43 = vadd.f32 %v1708_v33, %v909_v31  ;;  %v1711_v44 = vadd.f32 %v1710_v38, %v1709_v36  ;;  %v933_v30 = vadd.f32 %v2387_v28, %v2410_v10 }
 0x130   : > { %v941_v28 = vadd.f32 %v2391_v40, %v2410_v10  ;;  %v949_v40 = vadd.f32 %v2395_v52, %v2410_v10  ;;  %v957_v52 = vadd.f32 %v2399_v0, %v2410_v10 }
 0x131   : > { %v1103_v45 = vadd.f32 %v1807_v9, %v1006_v43  ;;  %v1009_v48 = vadd.f32 %v1711_v44, %v912_v35  ;;  %1837 = vmatprep.mubr.bf16.mxu1 %v1173_v41 }
 0x133   : > { %v1106_v49 = vadd.f32 %v1808_v16, %v1009_v48  ;;  %v1712_v50 = vpop.f32.mrb[24].mxu1  ;;  %v2416_v51 = vpop.f32.mrb[24].mxu0  ;;  %v1159_v56 = vmax.f32 %v1103_v45, 0.0 }
 0x134   : > { %v1713_v42 = vpop.f32.mrb[25].mxu1  ;;  %v1126_v53 = vpop.f32.mrb[25].mxu0 }
 0x135   : > { %v1160_v57 = vmax.f32 %v1106_v49, 0.0  ;;  %v1714_v60 = vadd.f32 %v1713_v42, %v1712_v50  ;;  %v1715_v61 = vpop.f32.mrb[26].mxu1  ;;  %v1816_v62 = vpop.f32.mrb[26].mxu0 }
 0x136   : > { %v1716_v47 = vpop.f32.mrb[27].mxu1  ;;  %v1129_v63 = vpop.f32.mrb[27].mxu0 }
 0x137   : > { %v1174_v3 = vpack.c.bf16 %v1160_v57, %v1159_v56  ;;  %v1717_v4 = vadd.f32 %v1716_v47, %v1715_v61  ;;  %v1014_v5 = vadd.f32 %v1714_v60, %v917_v55 }
 0x139   : > { %v1111_v8 = vadd.f32 %v1110_v29, %v1014_v5  ;;  %1838 = vmatmul.mubr.bf16.vlgmr.msra.gmra.mrb[48].mxu1 %v1174_v3  ;;  %v1017_v9 = vadd.f32 %v1717_v4, %v920_v1 }
 0x13b   : > { %v1114_v11 = vadd.f32 %v1113_v39, %v1017_v9  ;;  %v1718_v12 = vpop.f32.mrb[28].mxu1  ;;  %v2420_v13 = vpop.f32.mrb[28].mxu0  ;;  %v1161_v16 = vmax.f32 %v1111_v8, 0.0 }
 0x13c   : > { %v1719_v54 = vpop.f32.mrb[29].mxu1  ;;  %v1142_v14 = vpop.f32.mrb[29].mxu0 }
 0x13d   : > { %v1162_v17 = vmax.f32 %v1114_v11, 0.0  ;;  %v1720_v18 = vadd.f32 %v1719_v54, %v1718_v12  ;;  %v1721_v19 = vpop.f32.mrb[30].mxu1  ;;  %v2424_v59 = vpop.f32.mrb[30].mxu0 }
 0x13e   : > { %v1722_v20 = vpop.f32.mrb[31].mxu1  ;;  %v1145_v21 = vpop.f32.mrb[31].mxu0 }
 0x13f   : > { %v1175_v23 = vpack.c.bf16 %v1162_v17, %v1161_v16  ;;  %v1022_v24 = vadd.f32 %v1720_v18, %v925_v15  ;;  %v1723_v25 = vadd.f32 %v1722_v20, %v1721_v19 }
 0x141   : > { %v1119_v27 = vadd.f32 %v1811_v26, %v1022_v24  ;;  %v1025_v29 = vadd.f32 %v1723_v25, %v928_v22  ;;  %1841 = vmatprep.mubr.bf16.mxu1 %v1175_v23 }
 0x143   : > { %v1122_v31 = vadd.f32 %v1812_v37, %v1025_v29  ;;  %v1724_v32 = vpop.f32.mrb[32].mxu1  ;;  %v1163_v33 = vmax.f32 %v1119_v27, 0.0 }
 0x144   : > { %v1725_v2 = vpop.f32.mrb[33].mxu1 }
 0x145   : > { %v1164_v36 = vmax.f32 %v1122_v31, 0.0  ;;  %v1726_v38 = vadd.f32 %v1725_v2, %v1724_v32  ;;  %v1727_v39 = vpop.f32.mrb[34].mxu1 }
 0x146   : > { %v1728_v35 = vpop.f32.mrb[35].mxu1 }
 0x147   : > { %v1729_v41 = vadd.f32 %v1728_v35, %v1727_v39  ;;  %v1030_v43 = vadd.f32 %v1726_v38, %v933_v30  ;;  %v1176_v44 = vpack.c.bf16 %v1164_v36, %v1163_v33  ;;  %v2103_v33 = vmov 0.0  }
 0x148   : > { %1853 = vmatprep.subr.bf16.mxu0 %v2103_v33  ;;  %1869 = vmatprep.mubr.msk.bf16.mxu0 %vm2104_vm0, %v2103_v33 }
 0x149   : > { %v1127_v26 = vadd.f32 %v1126_v53, %v1030_v43  ;;  %1842 = vmatmul.mubr.bf16.gmra.mrb[52].mxu1 %v1176_v44  ;;  %v1033_v45 = vadd.f32 %v1729_v41, %v936_v7 }
 0x14b   : > { %v1130_v37 = vadd.f32 %v1129_v63, %v1033_v45  ;;  %v1730_v48 = vpop.f32.mrb[36].mxu1  ;;  %v1165_v50 = vmax.f32 %v1127_v26, 0.0 }
 0x14c   : > { %v1731_v49 = vpop.f32.mrb[37].mxu1 }
 0x14d   : > { %v1166_v42 = vmax.f32 %v1130_v37, 0.0  ;;  %v1732_v55 = vadd.f32 %v1731_v49, %v1730_v48  ;;  %v1733_v56 = vpop.f32.mrb[38].mxu1 }
 0x14e   : > { %v1734_v57 = vpop.f32.mrb[39].mxu1 }
 0x14f   : > { %v1177_v60 = vpack.c.bf16 %v1166_v42, %v1165_v50  ;;  %v1038_v61 = vadd.f32 %v1732_v55, %v941_v28  ;;  %v1735_v47 = vadd.f32 %v1734_v57, %v1733_v56 }
 0x151   : > { %v1135_v53 = vadd.f32 %v2416_v51, %v1038_v61  ;;  %v1041_v1 = vadd.f32 %v1735_v47, %v944_v34  ;;  %1845 = vmatprep.mubr.bf16.mxu1 %v1177_v60 }
 0x153   : > { %v1138_v63 = vadd.f32 %v1816_v62, %v1041_v1  ;;  %v1736_v3 = vpop.f32.mrb[40].mxu1  ;;  %v1167_v5 = vmax.f32 %v1135_v53, 0.0 }
 0x154   : > { %v1737_v4 = vpop.f32.mrb[41].mxu1 }
 0x155   : > { %v1168_v8 = vmax.f32 %v1138_v63, 0.0  ;;  %v1738_v9 = vadd.f32 %v1737_v4, %v1736_v3  ;;  %v1739_v11 = vpop.f32.mrb[42].mxu1 }
 0x156   : > { %v1740_v12 = vpop.f32.mrb[43].mxu1 }
 0x157   : > { %v1741_v54 = vadd.f32 %v1740_v12, %v1739_v11  ;;  %v1046_v15 = vadd.f32 %v1738_v9, %v949_v40  ;;  %v1178_v16 = vpack.c.bf16 %v1168_v8, %v1167_v5 }
 0x159   : > { %v1143_v51 = vadd.f32 %v1142_v14, %v1046_v15  ;;  %1846 = vmatmul.mubr.bf16.gmra.mrb[56].mxu1 %v1178_v16  ;;  %v1049_v17 = vadd.f32 %v1741_v54, %v952_v46 }
 0x15b   : > { %v1146_v62 = vadd.f32 %v1145_v21, %v1049_v17  ;;  %v1742_v18 = vpop.f32.mrb[44].mxu1  ;;  %v1169_v20 = vmax.f32 %v1143_v51, 0.0 }
 0x15c   : > { %v1743_v19 = vpop.f32.mrb[45].mxu1 }
 0x15d   : > { %v1170_v22 = vmax.f32 %v1146_v62, 0.0  ;;  %v1744_v23 = vadd.f32 %v1743_v19, %v1742_v18  ;;  %v1745_v24 = vpop.f32.mrb[46].mxu1 }
 0x15e   : > { %v1746_v25 = vpop.f32.mrb[47].mxu1 }
 0x15f   : > { %v1179_v27 = vpack.c.bf16 %v1170_v22, %v1169_v20  ;;  %v1054_v29 = vadd.f32 %v1744_v23, %v957_v52  ;;  %v1747_v31 = vadd.f32 %v1746_v25, %v1745_v24 }
 0x161   : > { %v1151_v14 = vadd.f32 %v2420_v13, %v1054_v29  ;;  %v1057_v32 = vadd.f32 %v1747_v31, %v960_v58  ;;  %1849 = vmatprep.mubr.bf16.mxu1 %v1179_v27 }
 0x163   : > { %v1154_v21 = vadd.f32 %v2424_v59, %v1057_v32  ;;  %v1171_v2 = vmax.f32 %v1151_v14, 0.0 }
 0x165   : > { %v1172_v30 = vmax.f32 %v1154_v21, 0.0 }
 0x167   : > { %v1180_v0 = vpack.c.bf16 %v1172_v30, %v1171_v2 }
 0x169   : > { %1850 = vmatmul.mubr.bf16.gmra.mrb[60].mxu1 %v1180_v0 }
 0x20c   : > { %v1839_v10 = vpop.f32.mrb[48].mxu1 }
 0x20d   : > { %v1295_v13 = vadd.f32 %v1839_v10, %v2452_v6  ;;  %v1286_v36 = vpop.f32.mrb[49].mxu1 }
 0x20e   : > { %v1287_v59 = vadd.f32 %v2452_v6, %v1286_v36  ;;  %v1840_v38 = vpop.f32.mrb[50].mxu1  ;;  %v1375_v36 = vstv %s1374_s21 }
 0x20f   : > { %v1298_v39 = vadd.f32 %v1840_v38, %v2452_v6  ;;  %v1289_v35 = vpop.f32.mrb[51].mxu1  ;;  %v1351_v41 = vmax.f32 %v1295_v13, 0.0 }
 0x210   : > { %v1290_v7 = vadd.f32 %v2452_v6, %v1289_v35  ;;  %v1349_v44 = vmax.f32 %v1287_v59, 0.0 }
 0x211   : > { %v1352_v43 = vmax.f32 %v1298_v39, 0.0 }
 0x212   : > { %v1350_v26 = vmax.f32 %v1290_v7, 0.0 }
 0x213   : > { %v1367_v45 = vpack.c.bf16 %v1352_v43, %v1351_v41 }
 0x214   : > { %v1366_v37 = vpack.c.bf16 %v1350_v26, %v1349_v44 }
 0x215   : > { %v1384_v56 = vsel %vm1376_vm1, %v1367_v45, 0 }
 0x216   : > { %v1381_v48 = vsel %vm1376_vm1, %v1366_v37, 0 }
 0x217   : > { %1854 = vmatpush3.bf16.xpose.msra.mxu0 %v1381_v48 }
 0x218   : > { %1855 = vmatprep.subr.bf16.mxu0 %v2103_v33 }
 0x21c   : > { %v1843_v49 = vpop.f32.mrb[52].mxu1 }
 0x21d   : > { %v1311_v28 = vadd.f32 %v1843_v49, %v2452_v6  ;;  %v1302_v50 = vpop.f32.mrb[53].mxu1 }
 0x21e   : > { %v1303_v42 = vadd.f32 %v2452_v6, %v1302_v50  ;;  %v1844_v55 = vpop.f32.mrb[54].mxu1 }
 0x21f   : > { %v1314_v57 = vadd.f32 %v1844_v55, %v2452_v6  ;;  %v1305_v34 = vpop.f32.mrb[55].mxu1  ;;  %1856 = vmatpush3.bf16.xpose.msra.mxu0 %v1384_v56  ;;  %v1355_v61 = vmax.f32 %v1311_v28, 0.0 }
 0x220   : > { %v1306_v60 = vadd.f32 %v2452_v6, %v1305_v34  ;;  %1857 = vmatprep.subr.bf16.mxu0 %v2103_v33  ;;  %v1353_v53 = vmax.f32 %v1303_v42, 0.0 }
 0x221   : > { %v1356_v47 = vmax.f32 %v1314_v57, 0.0 }
 0x222   : > { %v1354_v1 = vmax.f32 %v1306_v60, 0.0 }
 0x223   : > { %v1369_v63 = vpack.c.bf16 %v1356_v47, %v1355_v61 }
 0x224   : > { %v1368_v3 = vpack.c.bf16 %v1354_v1, %v1353_v53 }
 0x225   : > { %v1390_v12 = vsel %vm1376_vm1, %v1369_v63, 0 }
 0x226   : > { %v1387_v4 = vsel %vm1376_vm1, %v1368_v3, 0 }
 0x227   : > { %1858 = vmatpush3.bf16.xpose.msra.mxu0 %v1387_v4 }
 0x228   : > { %1859 = vmatprep.subr.bf16.mxu0 %v2103_v33 }
 0x22c   : > { %v1847_v40 = vpop.f32.mrb[56].mxu1 }
 0x22d   : > { %v1327_v5 = vadd.f32 %v1847_v40, %v2452_v6  ;;  %v1318_v8 = vpop.f32.mrb[57].mxu1 }
 0x22e   : > { %v1319_v9 = vadd.f32 %v2452_v6, %v1318_v8  ;;  %v1848_v11 = vpop.f32.mrb[58].mxu1 }
 0x22f   : > { %v1330_v46 = vadd.f32 %v1848_v11, %v2452_v6  ;;  %v1321_v54 = vpop.f32.mrb[59].mxu1  ;;  %1860 = vmatpush3.bf16.xpose.msra.mxu0 %v1390_v12  ;;  %v1359_v16 = vmax.f32 %v1327_v5, 0.0 }
 0x230   : > { %v1322_v15 = vadd.f32 %v2452_v6, %v1321_v54  ;;  %1861 = vmatprep.subr.bf16.mxu0 %v2103_v33  ;;  %v1357_v17 = vmax.f32 %v1319_v9, 0.0 }
 0x231   : > { %v1360_v51 = vmax.f32 %v1330_v46, 0.0 }
 0x232   : > { %v1358_v62 = vmax.f32 %v1322_v15, 0.0 }
 0x233   : > { %v1371_v18 = vpack.c.bf16 %v1360_v51, %v1359_v16 }
 0x234   : > { %v1370_v19 = vpack.c.bf16 %v1358_v62, %v1357_v17 }
 0x235   : > { %v1396_v58 = vsel %vm1376_vm1, %v1371_v18, 0 }
 0x236   : > { %v1393_v52 = vsel %vm1376_vm1, %v1370_v19, 0 }
 0x237   : > { %1862 = vmatpush3.bf16.xpose.msra.mxu0 %v1393_v52 }
 0x238   : > { %1863 = vmatprep.subr.bf16.mxu0 %v2103_v33 }
 0x23c   : > { %v1851_v20 = vpop.f32.mrb[60].mxu1 }
 0x23d   : > { %v1343_v22 = vadd.f32 %v1851_v20, %v2452_v6  ;;  %v1334_v23 = vpop.f32.mrb[61].mxu1 }
 0x23e   : > { %v1335_v24 = vadd.f32 %v2452_v6, %v1334_v23  ;;  %v1852_v25 = vpop.f32.mrb[62].mxu1 }
 0x23f   : > { %v1346_v27 = vadd.f32 %v1852_v25, %v2452_v6  ;;  %v1337_v29 = vpop.f32.mrb[63].mxu1  ;;  %1864 = vmatpush3.bf16.xpose.msra.mxu0 %v1396_v58  ;;  %v1363_v14 = vmax.f32 %v1343_v22, 0.0 }
 0x240   : > { %v1338_v31 = vadd.f32 %v2452_v6, %v1337_v29  ;;  %1865 = vmatprep.subr.bf16.mxu0 %v2103_v33  ;;  %v1361_v21 = vmax.f32 %v1335_v24, 0.0  ;;  %v1365_v6 = vld [vmem:[%s2541_s5] sm:$0x1] }
 0x241   : > { %v1364_v32 = vmax.f32 %v1346_v27, 0.0 }
 0x242   : > { %v1362_v2 = vmax.f32 %v1338_v31, 0.0 }
 0x243   : > { %v1373_v30 = vpack.c.bf16 %v1364_v32, %v1363_v14 }
 0x244   : > { %v1372_v0 = vpack.c.bf16 %v1362_v2, %v1361_v21 }
 0x245   : > { %v1402_v13 = vsel %vm1376_vm1, %v1373_v30, 0 }
 0x246   : > { %v1399_v10 = vsel %vm1376_vm1, %v1372_v0, 0 }
 0x247   : > { %1866 = vmatpush3.bf16.xpose.msra.mxu0 %v1399_v10 }
 0x248   : > { %1867 = vmatprep.subr.bf16.mxu0 %v2103_v33 }
 0x24f   : > { %1868 = vmatpush3.bf16.xpose.msra.mxu0 %v1402_v13 }
 0x256   : > { %1870 = vmatmul.mubr.msk.bf16.vlgmr.msra.gmra.mrb[32].mxu0 %vm1376_vm1, %v1365_v6 }
 0x329   : > { %v1438_v59 = vpop.f32.mrb[32].mxu0 }
 0x32a   : > { %v1439_v38 = vadd.f32 %v1438_v59, %v1375_v36  ;;  %v1871_v39 = vpop.f32.mrb[33].mxu0 }
 0x32b   : > { %v1441_v35 = vpop.f32.mrb[34].mxu0 }
 0x32c   : > { %v1616_v7 = vmul.f32 -1.442695, %v1439_v38  ;;  %v1872_v33 = vpop.f32.mrb[35].mxu0 }
 0x32e   : > { %2035 = vpow2.f32 %v1616_v7 }
 0x338   : > { %v2036_v41 = vpop.eup %2035 }
 0x339   : > { %v1447_v43 = vadd.f32 1.0, %v2036_v41 }
 0x33b   : > { %2037 = vrcp.f32 %v1447_v43 }
 0x345   : > { %v2038_v44 = vpop.eup %2037 }
 0x346   : > { %1450 = vst [vmem:[%s274_s24] sm:$0x1] %v2038_v44 }
 0x347   : > { %2052 = shalt.err (!%p2049_p3)
}
 0x348   : > { %s2053_s16 = scalar_lea.hbm %s2494_s30, 16  ;;  %s2057_s20 = scalar_lea.hbm %s2543_s7, 32 }
 0x349   : > { %p2054_p4 = scmp.ne.s32.totalorder %s2494_s30, %s2053_s16  ;;  %p2058_p9 = scmp.lt.u32.totalorder %s2494_s30, %s2543_s7 }
 0x34a   : > { %p2059_p10 = scmp.lt.u32.totalorder %s2057_s20, %s2053_s16  ;;  %p2061_p12 = scmp.lt.u32.totalorder %s2053_s16, %s2494_s30 }
 0x34b   : > { %p2055_p7 = pnand %p2054_p4, %p2184_p5 }
 0x34c   : > { %p2060_p11 = por %p2059_p10, %p2058_p9 }
 0x34d   : > { %p2056_p8 = pneg %p2055_p7 }
 0x34e   : > { %p2062_p13 = por %p2061_p12, %p2060_p11 }
 0x350   : > { %p2063_p0 = pnand %p2062_p13, %p2056_p8 }
 0x352   : > { %2066 = shalt.err (!%p2063_p0)
}
 0x353   : > { %1890 = dma.vmem_to_hbm [thread:$0]  (%p2184_p5), %s2496_s22, 16, %s2494_s30, %s1452_s9  }
 0x354 PF: > { %p1896_p1 = scmp.ge.s32.totalorder %s2101_s29, 2  ;;  %s1476_s24 = sand.u32 1, %s2089_s26  }
 0x355   : > { %s1477_s25 = scalar_lea.sflag [#allocation4], %s1476_s24 }
 0x356   : > { %p1893_p2 = pnand %p1896_p1, %p2188_p6 }
 0x358   : > { %2084 = dma.done.wait (!%p1893_p2), %s1477_s25, 16  }
 0x359   : > { %2086 = vsyncadd (!%p1893_p2), %s1477_s25, 4294967280  ;;  %p18_p3 = scmp.ge.s32.totalorder %s2172_s8, 4   ;;  %s2546_s26 = smov %s2093_s27 }
 0x35a   : > { %s2547_s27 = smov %s2097_s28  ;;  %s2548_s28 = smov %s2182_s11 }
 0x35b   : > { %s2549_s29 = smov %s2172_s8  ;;  %20 = sbr.rel (!%p18_p3) target bundleno = 5 (0x5), region = 83 }
 0x362   :  { %1481 = vsyncpa [#allocation4], 1 }
 0x363   :  { %1483 = vsyncpa [#allocation4 + $0x1], 1 }

</bundles_post_ra>
